<compile_context>
chip_gen: v7x
topology: tpu7x:2x2x1
jax: 0.10.0
libtpu: 0.0.40
codegen_flags: <defaults>
</compile_context>

<pallas_src>
import jax
import jax.numpy as jnp
from jax import lax
from jax.experimental import pallas as pl
from jax.experimental.pallas import tpu as pltpu


def _make_my_loss_kernel(B: int, tb: int, num_tiles: int):
    ragged = (num_tiles * tb) != B

    def kernel(sa_ref, sg_ref, sw_ref, out_ref):
        i = pl.program_id(0)

        # ---- dominant stream: masked row-max over this (tb, B) row slab --------
        # Mask + max run in the native input dtype (deferred f32 cast).
        sw = sw_ref[...]                                             # (tb, B)
        col = lax.broadcasted_iota(jnp.int32, (tb, B), 1)
        row = lax.broadcasted_iota(jnp.int32, (tb, 1), 0)
        diag = col == (row + i * tb)          # global diagonal inside this slab
        sw = jnp.where(diag, jnp.zeros((), sw.dtype), sw)
        sw_max = jnp.max(sw, axis=1, keepdims=True).astype(jnp.float32)  # (tb, 1)

        d_rows = 0.5 * jnp.log(1.0 - sw_max)                         # (tb, 1) f32
        if ragged:
            # Padded rows of the last tile hold arbitrary data; zero them *before*
            # the sum (their log may be NaN, but where() does not propagate it).
            grow = row + i * tb
            d_rows = jnp.where(grow < B, d_rows, 0.0)
        d_part = jnp.sum(d_rows)

        # ---- per-tile partial sums -> this tile's own (1, 8, 128) output block --
        sub = lax.broadcasted_iota(jnp.int32, (1, 8, 128), 1)
        lane = lax.broadcasted_iota(jnp.int32, (1, 8, 128), 2)
        is_g = (sub == 0) & (lane == 0)
        is_d = (sub == 0) & (lane == 1)
        out_ref[...] = jnp.where(is_d, d_part, jnp.float32(0.0))

        # ---- hoisted sc_actual / sc_gen terms: computed exactly once (tile 0) ---
        @pl.when(i == 0)
        def _first_tile():
            sa = sa_ref[...].astype(jnp.float32)                     # (1, B)
            sg = sg_ref[...].astype(jnp.float32)                     # (1, B)
            g0 = jnp.sum(jnp.log(sg))
            d0 = jnp.sum(jnp.log(sa)) + 0.5 * jnp.sum(jnp.log(1.0 - sg))
            out_ref[...] += jnp.where(is_g, g0,
                                      jnp.where(is_d, d0, jnp.float32(0.0)))

    return kernel


def my_loss(sc_actual, sc_gen, sc_wrong, *, max_slab_bytes=8 * 1024 * 1024):
    """Pallas implementation of myLoss.forward.  Returns (G_loss, D_loss)."""
    B = sc_wrong.shape[0]
    assert sc_wrong.shape == (B, B)
    esize = jnp.dtype(sc_wrong.dtype).itemsize
    row_bytes = B * esize

    # Row-tile size: single shot for small problems; otherwise stream
    # ~max_slab_bytes row slabs with near-even tiling (multiple-of-8 rows).
    if B * row_bytes <= max_slab_bytes:
        tb, num_tiles = B, 1
    else:
        tb_max = max(8, ((max_slab_bytes // row_bytes) // 8) * 8)
        num_tiles = pl.cdiv(B, tb_max)
        tb = ((pl.cdiv(B, num_tiles) + 7) // 8) * 8
        num_tiles = pl.cdiv(B, tb)
    # TODO(synk): for B large enough that even an 8-row slab blows the scoped VMEM
    # budget (B ~> 250k), add a column-reduction grid axis with a running row-max
    # scratch (v5e feedback item); irrelevant at this module's batch sizes.

    slab_bytes = tb * B * esize
    vmem_limit = int(max(16 * 1024 * 1024,
                         min(48 * 1024 * 1024,
                             2 * slab_bytes + 4 * B * esize + 4 * 1024 * 1024)))

    sa2 = sc_actual.reshape(1, B)
    sg2 = sc_gen.reshape(1, B)

    parts = pl.pallas_call(
        _make_my_loss_kernel(B, tb, num_tiles),
        out_shape=jax.ShapeDtypeStruct((num_tiles, 8, 128), jnp.float32),
        grid=(num_tiles,),
        in_specs=[
            pl.BlockSpec((1, B), lambda i: (0, 0)),     # sc_actual (resident)
            pl.BlockSpec((1, B), lambda i: (0, 0)),     # sc_gen (resident)
            pl.BlockSpec((tb, B), lambda i: (i, 0)),    # sc_wrong row slab (streamed)
        ],
        out_specs=pl.BlockSpec((1, 8, 128), lambda i: (i, 0, 0)),
        compiler_params=pltpu.CompilerParams(
            dimension_semantics=("parallel",),
            vmem_limit_bytes=vmem_limit),
    )(sa2, sg2, sc_wrong)

    # Tiny final reduction + 1/B scaling in the wrapper keeps the grid axis fully
    # parallel (shardable across v7x's two TensorCores).
    sums = jnp.sum(parts, axis=(0, 1))          # (128,)
    inv_b = jnp.float32(1.0 / B)
    return sums[0] * inv_b, sums[1] * inv_b


def _reference(sc_actual, sc_gen, sc_wrong):
    """Pure-JAX reference of the PyTorch module (computed in f32)."""
    B = sc_wrong.shape[0]
    sa = sc_actual.astype(jnp.float32).reshape(-1)
    sg = sc_gen.astype(jnp.float32).reshape(-1)
    sw = sc_wrong.astype(jnp.float32)
    sw = jnp.where(jnp.eye(B, dtype=bool), 0.0, sw)
    swm = jnp.max(sw, axis=1)
    d = jnp.mean(jnp.log(sa) + (jnp.log(1.0 - swm) + jnp.log(1.0 - sg)) / 2.0)
    g = jnp.mean(jnp.log(sg))
    return g, d


if __name__ == "__main__":
    key = jax.random.PRNGKey(0)

    # (B, dtype, max_slab_bytes): single-tile, multi-tile + ragged last tile,
    # and a multi-tile native-bf16 (deferred-cast) case.
    cases = [
        (8,   jnp.float32,  None),
        (130, jnp.float32,  16 * 1024),
        (256, jnp.bfloat16, 32 * 1024),
    ]

    for B, dt, cap in cases:
        k1, k2, k3 = jax.random.split(jax.random.fold_in(key, B), 3)
        # Scores in the open interval (0, 1) so all logs are finite.
        sc_actual = jax.random.uniform(k1, (B,), jnp.float32, 0.05, 0.95).astype(dt)
        sc_gen = jax.random.uniform(k2, (B,), jnp.float32, 0.05, 0.95).astype(dt)
        sc_wrong = jax.random.uniform(k3, (B, B), jnp.float32, 0.05, 0.95).astype(dt)

        if cap is None:
            g_loss, d_loss = my_loss(sc_actual, sc_gen, sc_wrong)
        else:
            g_loss, d_loss = my_loss(sc_actual, sc_gen, sc_wrong, max_slab_bytes=cap)
        jax.block_until_ready((g_loss, d_loss))

        g_ref, d_ref = _reference(sc_actual, sc_gen, sc_wrong)
        assert jnp.allclose(g_loss, g_ref, atol=2e-5, rtol=2e-5), (B, g_loss, g_ref)
        assert jnp.allclose(d_loss, d_ref, atol=2e-5, rtol=2e-5), (B, d_loss, d_ref)

    print("KERNEL_OK")
</pallas_src>

<mosaic_0001>
module attributes {stable_mosaic.version = 11 : i64} {
  func.func @kernel(%arg0: i32, %arg1: memref<1x8xf32, #tpu.memory_space<vmem>>, %arg2: memref<1x8xf32, #tpu.memory_space<vmem>>, %arg3: memref<8x8xf32, #tpu.memory_space<vmem>>, %arg4: memref<1x8x128xf32, #tpu.memory_space<vmem>>) attributes {dimension_semantics = [#tpu.dimension_semantics<parallel>], iteration_bounds = array<i64: 1>, scalar_prefetch = 0 : i64, scratch_operands = 0 : i64, tpu.core_type = #tpu.core_type<tc>, window_params = [{pipeline_mode = #tpu.pipeline_mode<synchronous>, transform_indices = @transform_0, window_bounds = array<i64: 1, 8>}, {pipeline_mode = #tpu.pipeline_mode<synchronous>, transform_indices = @transform_1, window_bounds = array<i64: 1, 8>}, {transform_indices = @transform_2, window_bounds = array<i64: 8, 8>}, {transform_indices = @transform_3, window_bounds = array<i64: 1, 8, 128>}]} {
    %c0 = arith.constant 0 : index
    %c0_0 = arith.constant 0 : index
    %0 = vector.load %arg3[%c0, %c0_0] : memref<8x8xf32, #tpu.memory_space<vmem>>, vector<8x8xf32>
    %1 = tpu.iota {dimensions = array<i32: 1>} : vector<8x8xi32>
    %2 = tpu.iota {dimensions = array<i32: 0>} : vector<8x1xi32>
    %c8_i32 = arith.constant 8 : i32
    %3 = arith.muli %arg0, %c8_i32 : i32
    %4 = vector.broadcast %3 : i32 to vector<8x1xi32>
    %5 = arith.addi %2, %4 : vector<8x1xi32>
    %6 = vector.broadcast %5 : vector<8x1xi32> to vector<8x8xi32>
    %7 = arith.cmpi eq, %1, %6 : vector<8x8xi32>
    %cst = arith.constant 0.000000e+00 : f32
    %8 = vector.broadcast %cst : f32 to vector<8x8xf32>
    %9 = arith.select %7, %8, %0 : vector<8x8xi1>, vector<8x8xf32>
    %cst_1 = arith.constant dense<0xFF800000> : vector<8xf32>
    %10 = vector.multi_reduction <maximumf>, %9, %cst_1 [1] : vector<8x8xf32> to vector<8xf32>
    %11 = vector.shape_cast %10 : vector<8xf32> to vector<8x1xf32>
    %cst_2 = arith.constant 1.000000e+00 : f32
    %12 = vector.broadcast %cst_2 : f32 to vector<8x1xf32>
    %13 = arith.subf %12, %11 : vector<8x1xf32>
    %14 = math.log %13 : vector<8x1xf32>
    %cst_3 = arith.constant 5.000000e-01 : f32
    %15 = vector.broadcast %cst_3 : f32 to vector<8x1xf32>
    %16 = arith.mulf %15, %14 : vector<8x1xf32>
    %17 = vector.shape_cast %16 : vector<8x1xf32> to vector<1x8x1xf32>
    %cst_4 = arith.constant dense<0.000000e+00> : vector<1xf32>
    %18 = vector.multi_reduction <add>, %17, %cst_4 [1, 2] : vector<1x8x1xf32> to vector<1xf32>
    %19 = vector.shape_cast %18 : vector<1xf32> to vector<1x1x1xf32>
    %20 = vector.extract %19[0, 0, 0] : f32 from vector<1x1x1xf32>
    %21 = tpu.iota {dimensions = array<i32: 1>} : vector<1x8x128xi32>
    %22 = tpu.iota {dimensions = array<i32: 2>} : vector<1x8x128xi32>
    %c0_i32 = arith.constant 0 : i32
    %23 = vector.broadcast %c0_i32 : i32 to vector<1x8x128xi32>
    %24 = arith.cmpi eq, %21, %23 : vector<1x8x128xi32>
    %c0_i32_5 = arith.constant 0 : i32
    %25 = vector.broadcast %c0_i32_5 : i32 to vector<1x8x128xi32>
    %26 = arith.cmpi eq, %22, %25 : vector<1x8x128xi32>
    %27 = arith.andi %24, %26 : vector<1x8x128xi1>
    %c0_i32_6 = arith.constant 0 : i32
    %28 = vector.broadcast %c0_i32_6 : i32 to vector<1x8x128xi32>
    %29 = arith.cmpi eq, %21, %28 : vector<1x8x128xi32>
    %c1_i32 = arith.constant 1 : i32
    %30 = vector.broadcast %c1_i32 : i32 to vector<1x8x128xi32>
    %31 = arith.cmpi eq, %22, %30 : vector<1x8x128xi32>
    %32 = arith.andi %29, %31 : vector<1x8x128xi1>
    %cst_7 = arith.constant 0.000000e+00 : f32
    %33 = vector.broadcast %20 : f32 to vector<1x8x128xf32>
    %34 = vector.broadcast %cst_7 : f32 to vector<1x8x128xf32>
    %35 = arith.select %32, %33, %34 : vector<1x8x128xi1>, vector<1x8x128xf32>
    %c0_8 = arith.constant 0 : index
    %c0_9 = arith.constant 0 : index
    %c0_10 = arith.constant 0 : index
    %36 = vector.load %arg4[%c0_8, %c0_9, %c0_10] : memref<1x8x128xf32, #tpu.memory_space<vmem>>, vector<1x8x128xf32>
    tpu.vector_store %arg4[%c0_8, %c0_9, %c0_10], %35 {strides = array<i32>} : memref<1x8x128xf32, #tpu.memory_space<vmem>>, vector<1x8x128xf32>,
    %c0_i32_11 = arith.constant 0 : i32
    %37 = arith.cmpi eq, %arg0, %c0_i32_11 : i32
    %38 = arith.extui %37 : i1 to i32
    %c0_i32_12 = arith.constant 0 : i32
    %39 = arith.cmpi ne, %38, %c0_i32_12 : i32
    scf.if %39 {
      %c0_13 = arith.constant 0 : index
      %c0_14 = arith.constant 0 : index
      %40 = vector.load %arg1[%c0_13, %c0_14] : memref<1x8xf32, #tpu.memory_space<vmem>>, vector<1x8xf32>
      %c0_15 = arith.constant 0 : index
      %c0_16 = arith.constant 0 : index
      %41 = vector.load %arg2[%c0_15, %c0_16] : memref<1x8xf32, #tpu.memory_space<vmem>>, vector<1x8xf32>
      %42 = math.log %41 : vector<1x8xf32>
      %43 = vector.shape_cast %42 : vector<1x8xf32> to vector<1x1x8xf32>
      %cst_17 = arith.constant dense<0.000000e+00> : vector<1xf32>
      %44 = vector.multi_reduction <add>, %43, %cst_17 [1, 2] : vector<1x1x8xf32> to vector<1xf32>
      %45 = vector.shape_cast %44 : vector<1xf32> to vector<1x1x1xf32>
      %46 = vector.extract %45[0, 0, 0] : f32 from vector<1x1x1xf32>
      %47 = math.log %40 : vector<1x8xf32>
      %48 = vector.shape_cast %47 : vector<1x8xf32> to vector<1x1x8xf32>
      %cst_18 = arith.constant dense<0.000000e+00> : vector<1xf32>
      %49 = vector.multi_reduction <add>, %48, %cst_18 [1, 2] : vector<1x1x8xf32> to vector<1xf32>
      %50 = vector.shape_cast %49 : vector<1xf32> to vector<1x1x1xf32>
      %51 = vector.extract %50[0, 0, 0] : f32 from vector<1x1x1xf32>
      %cst_19 = arith.constant 1.000000e+00 : f32
      %52 = vector.broadcast %cst_19 : f32 to vector<1x8xf32>
      %53 = arith.subf %52, %41 : vector<1x8xf32>
      %54 = math.log %53 : vector<1x8xf32>
      %55 = vector.shape_cast %54 : vector<1x8xf32> to vector<1x1x8xf32>
      %cst_20 = arith.constant dense<0.000000e+00> : vector<1xf32>
      %56 = vector.multi_reduction <add>, %55, %cst_20 [1, 2] : vector<1x1x8xf32> to vector<1xf32>
      %57 = vector.shape_cast %56 : vector<1xf32> to vector<1x1x1xf32>
      %58 = vector.extract %57[0, 0, 0] : f32 from vector<1x1x1xf32>
      %cst_21 = arith.constant 5.000000e-01 : f32
      %59 = arith.mulf %cst_21, %58 : f32
      %60 = arith.addf %51, %59 : f32
      %c0_22 = arith.constant 0 : index
      %c0_23 = arith.constant 0 : index
      %c0_24 = arith.constant 0 : index
      %61 = vector.load %arg4[%c0_22, %c0_23, %c0_24] : memref<1x8x128xf32, #tpu.memory_space<vmem>>, vector<1x8x128xf32>
      %cst_25 = arith.constant 0.000000e+00 : f32
      %62 = vector.broadcast %60 : f32 to vector<1x8x128xf32>
      %63 = vector.broadcast %cst_25 : f32 to vector<1x8x128xf32>
      %64 = arith.select %32, %62, %63 : vector<1x8x128xi1>, vector<1x8x128xf32>
      %65 = vector.broadcast %46 : f32 to vector<1x8x128xf32>
      %66 = arith.select %27, %65, %64 : vector<1x8x128xi1>, vector<1x8x128xf32>
      %67 = arith.addf %61, %66 : vector<1x8x128xf32>
      %c0_26 = arith.constant 0 : index
      %c0_27 = arith.constant 0 : index
      %c0_28 = arith.constant 0 : index
      %68 = vector.load %arg4[%c0_26, %c0_27, %c0_28] : memref<1x8x128xf32, #tpu.memory_space<vmem>>, vector<1x8x128xf32>
      tpu.vector_store %arg4[%c0_26, %c0_27, %c0_28], %67 {strides = array<i32>} : memref<1x8x128xf32, #tpu.memory_space<vmem>>, vector<1x8x128xf32>,
    } else {
    }
    return
  }
  func.func @transform_0(%arg0: i32) -> (i32, i32) {
    %c0_i32 = arith.constant 0 : i32
    %c0_i32_0 = arith.constant 0 : i32
    %c0_i32_1 = arith.constant 0 : i32
    return %c0_i32, %c0_i32_0 : i32, i32
  }
  func.func @transform_1(%arg0: i32) -> (i32, i32) {
    %c0_i32 = arith.constant 0 : i32
    %c0_i32_0 = arith.constant 0 : i32
    %c0_i32_1 = arith.constant 0 : i32
    return %c0_i32, %c0_i32_0 : i32, i32
  }
  func.func @transform_2(%arg0: i32) -> (i32, i32) {
    %c0_i32 = arith.constant 0 : i32
    %c0_i32_0 = arith.constant 0 : i32
    return %arg0, %c0_i32 : i32, i32
  }
  func.func @transform_3(%arg0: i32) -> (i32, i32, i32) {
    %c0_i32 = arith.constant 0 : i32
    %c0_i32_0 = arith.constant 0 : i32
    %c0_i32_1 = arith.constant 0 : i32
    return %arg0, %c0_i32, %c0_i32_0 : i32, i32, i32
  }
}

</mosaic_0001>

<bundles_post_ra>
// kernel: tpu_custom_call.1
= control target key start
LH: loop header
LB: loop body
LE: loop exit
PB: predicated region body
PF: predicated region fallthrough
CT: control target
= control target key end

     0   :  { %8 = vsyncpa [#allocation3], 0  ;;  %s307_s0 = inlined_call_operand.hbm [shape: f32[1,8], index: 0, kind: input, shape index: {}]   ;;  %s308_s1 = inlined_call_operand.vmem [shape: f32[1,8], index: 1, kind: input, shape index: {}]   ;;  %s309_s2 = inlined_call_operand.hbm [shape: f32[8,8], index: 2, kind: input, shape index: {}]   ;;  %s310_s3 = inlined_call_operand.hbm [shape: f32[1,8,128], index: 3, kind: output, shape index: {}]  }
   0x1   :  { %9 = vsyncpa [#allocation6], 0 }
   0x2   :  { %10 = vsyncpa [#allocation4], 0  ;;  %s236_s12 = smov [#allocation2]   ;;  %s237_s14 = smov [#allocation5]  }
   0x3   :  { %s17_s13 = sshll.u32 %s236_s12, 4  ;;  %s29_s15 = sshll.u32 %s237_s14, 4  ;;  %s18_s13 = int_to_ptr.vmem [resolvable:$true] %s17_s13  ;;  %s30_s15 = int_to_ptr.vmem [resolvable:$true] %s29_s15 }
   0x4   :  { %s164_s18 = scalar_lea.hbm %s307_s0, 16 }
   0x5   :  { %p165_p0 = scmp.ne.s32.totalorder %s307_s0, %s164_s18  ;;  %p168_p1 = scmp.lt.u32.totalorder %s164_s18, %s307_s0 }
   0x7   :  { %p170_p2 = pnand %p168_p1, %p165_p0 }
   0x9   :  { %173 = shalt.err (!%p170_p2)
}
   0xa   :  { %s174_s23 = scalar_lea.vmem %s18_s13, 16  ;;  %s178_s24 = scalar_lea.vmem %s18_s13, 32 }
   0xb   :  { %p175_p3 = scmp.ne.s32.totalorder %s18_s13, %s174_s23  ;;  %p179_p4 = scmp.lt.s32.totalorder %s18_s13, %s18_s13 }
   0xc   :  { %p180_p5 = scmp.lt.s32.totalorder %s178_s24, %s174_s23 }
   0xe   :  { %p181_p6 = por %p180_p5, %p179_p4 }
  0x10   :  { %p182_p7 = pnand %p181_p6, %p175_p3 }
  0x12   :  { %185 = shalt.err (!%p182_p7)
}
  0x13   :  { %20 = dma.hbm_to_vmem [thread:$0]  %s307_s0, 16, %s18_s13, [#allocation3]  }
  0x14   :  { %s186_s29 = scalar_lea.hbm %s309_s2, 128 }
  0x15   :  { %p187_p8 = scmp.ne.s32.totalorder %s309_s2, %s186_s29  ;;  %p190_p9 = scmp.lt.u32.totalorder %s186_s29, %s309_s2 }
  0x17   :  { %p192_p10 = pnand %p190_p9, %p187_p8 }
  0x19   :  { %195 = shalt.err (!%p192_p10)
}
  0x1a   :  { %s196_s7 = scalar_lea.vmem %s30_s15, 128  ;;  %p201_p12 = scmp.lt.s32.totalorder %s30_s15, %s30_s15 }
  0x1b   :  { %p197_p11 = scmp.ne.s32.totalorder %s30_s15, %s196_s7  ;;  %p202_p13 = scmp.lt.s32.totalorder %s196_s7, %s196_s7 }
  0x1d   :  { %p203_p0 = por %p202_p13, %p201_p12 }
  0x1f   :  { %p204_p1 = pnand %p203_p0, %p197_p11 }
  0x21   :  { %207 = shalt.err (!%p204_p1)
}
  0x22   :  { %32 = dma.hbm_to_vmem [thread:$0]  %s309_s2, 128, %s30_s15, [#allocation6]  }
  0x23   :  { %230 = dma.done.wait [#allocation3], 16  }
  0x24   :  { %231 = vsyncadd [#allocation3], 4294967280 }
  0x25   :  { %232 = dma.done.wait [#allocation6], 128  }
  0x26   :  { %233 = vsyncadd [#allocation6], 4294967168  ;;  %v40_v0 = vlaneseq  ;;  %vm49_vm1 = vcmask 64512   ;;  %v39_v3 = vld [vmem:[#allocation5] sm:$0xff]  ;;  %v81_v6 = vld [vmem:[%s308_s1] sm:$0x1] }
  0x27   :  { %156 = vlog2.f32 %v81_v6  ;;  %v80_v7 = vld [vmem:[#allocation2] sm:$0x1]  ;;  %v107_v8 = vsub.f32 1.0, %v81_v6  ;;  %vm84_vm2 = vcmask 57344   ;;  %vm57_vm3 = vcmask 7168   ;;  %s238_s15 = smov [#allocation7]  }
  0x28   :  { %v283_v1 = vand.u32 127, %v40_v0  ;;  %v285_v2 = vshrl.u32 %v40_v0, 7  ;;  %158 = vlog2.f32 %v80_v7  ;;  %s135_s16 = sshll.u32 %s238_s15, 4  ;;  %s136_s16 = int_to_ptr.vmem [resolvable:$true] %s135_s16 }
  0x29   :  { %160 = vlog2.f32 %v107_v8  ;;  %s208_s17 = scalar_lea.vmem %s136_s16, 128  ;;  %p213_p3 = scmp.lt.s32.totalorder %s136_s16, %s136_s16 }
  0x2a   :  { %vm47_vm0 = vcmp.eq.s32.totalorder %v283_v1, %v285_v2  ;;  %vm69_vm4 = vcmp.eq.s32.totalorder %v283_v1, 0  ;;  %vm68_vm5 = vcmp.eq.s32.totalorder %v285_v2, 0  ;;  %vm71_vm6 = vcmp.eq.s32.totalorder %v283_v1, 1  ;;  %p209_p2 = scmp.ne.s32.totalorder %s136_s16, %s208_s17  ;;  %p214_p4 = scmp.lt.s32.totalorder %s208_s17, %s208_s17 }
  0x2b   :  { %v48_v4 = vsel %vm47_vm0, 0.0, %v39_v3  ;;  %vm70_vm7 = vmand %vm68_vm5, %vm69_vm4 }
  0x2c   :  { %v50_v5 = vsel %vm49_vm1, %v48_v4, -inf  ;;  %vm72_vm8 = vmand %vm68_vm5, %vm71_vm6  ;;  %p215_p5 = por %p214_p4, %p213_p3 }
  0x2d   :  { %51 = vmax.xlane.f32.xlu0 %v50_v5 }
  0x2e   :  { %p216_p6 = pnand %p215_p5, %p209_p2 }
  0x31   :  { %v157_v9 = vpop.eup %156 }
  0x32   :  { %v83_v10 = vmul.f32 0.6931472, %v157_v9  ;;  %v159_v12 = vpop.eup %158 }
  0x33   :  { %v96_v13 = vmul.f32 0.6931472, %v159_v12  ;;  %v161_v15 = vpop.eup %160 }
  0x34   :  { %v85_v11 = vsel %vm84_vm2, %v83_v10, 0.0  ;;  %v109_v16 = vmul.f32 0.6931472, %v161_v15 }
  0x35   :  { %86 = vadd.xlane.f32.xlu1 %v85_v11  ;;  %v97_v14 = vsel %vm84_vm2, %v96_v13, 0.0 }
  0x36   :  { %v110_v17 = vsel %vm84_vm2, %v109_v16, 0.0 }
  0x39   :  { %98 = vadd.xlane.f32.xlu1 %v97_v14 }
  0xba   :  { %v52_v18 = vpop.xlane.xlu0 %51 }
  0xbb   :  { %v53_v19 = vsub.f32 1.0, %v52_v18 }
  0xbd   :  { %162 = vlog2.f32 %v53_v19 }
  0xc2   :  { %v87_v24 = vpop.xlane.xlu1 %86 }
  0xc3   :  { %v88_v26 = vrot.slane %v87_v24, 4 }
  0xc5   :  { %v89_v28 = vadd.f32 %v88_v26, %v87_v24 }
  0xc6   :  { %v99_v25 = vpop.xlane.xlu1 %98 }
  0xc7   :  { %v163_v20 = vpop.eup %162  ;;  %v100_v27 = vrot.slane %v99_v25, 4  ;;  %v90_v30 = vrot.slane %v89_v28, 2 }
  0xc8   :  { %v55_v21 = vmul.f32 0.6931472, %v163_v20 }
  0xc9   :  { %v101_v29 = vadd.f32 %v100_v27, %v99_v25  ;;  %v91_v36 = vadd.f32 %v90_v30, %v89_v28 }
  0xca   :  { %v56_v22 = vmul.f32 0.5, %v55_v21 }
  0xcb   :  { %v102_v32 = vrot.slane %v101_v29, 2  ;;  %v92_v42 = vrot.slane %v91_v36, 1 }
  0xcc   :  { %v58_v23 = vsel %vm57_vm3, %v56_v22, 0.0 }
  0xcd   :  { %59 = vadd.xlane.f32.xlu0 %v58_v23  ;;  %v103_v37 = vadd.f32 %v102_v32, %v101_v29  ;;  %v93_v48 = vadd.f32 %v92_v42, %v91_v36 }
  0xcf   :  { %v104_v45 = vrot.slane %v103_v37, 1 }
  0xd1   :  { %111 = vadd.xlane.f32.xlu0 %v110_v17  ;;  %v105_v49 = vadd.f32 %v104_v45, %v103_v37 }
 0x15a   :  { %v60_v31 = vpop.xlane.xlu0 %59 }
 0x15b   :  { %v61_v33 = vrot.slane %v60_v31, 4 }
 0x15d   :  { %v62_v34 = vadd.f32 %v61_v33, %v60_v31 }
 0x15e   :  { %v112_v35 = vpop.xlane.xlu0 %111 }
 0x15f   :  { %v63_v38 = vrot.slane %v62_v34, 2  ;;  %v113_v39 = vrot.slane %v112_v35, 4 }
 0x161   :  { %v114_v40 = vadd.f32 %v113_v39, %v112_v35  ;;  %v64_v41 = vadd.f32 %v63_v38, %v62_v34 }
 0x163   :  { %v115_v43 = vrot.slane %v114_v40, 2  ;;  %v65_v44 = vrot.slane %v64_v41, 1 }
 0x165   :  { %v116_v46 = vadd.f32 %v115_v43, %v114_v40  ;;  %v66_v47 = vadd.f32 %v65_v44, %v64_v41 }
 0x167   :  { %145 = vpush %v66_v47  ;;  %v117_v50 = vrot.slane %v116_v46, 1 }
 0x168   :  { %147 = vpush %v93_v48 }
 0x169   :  { %149 = vpush %v105_v49  ;;  %v118_v51 = vadd.f32 %v117_v50, %v116_v46 }
 0x16b   :  { %151 = vpush %v118_v51 }
 0x198   :  { %s146_s1 = spop %145 }
 0x199   :  { %s148_s2 = spop %147  ;;  %v73_v52 = vstv %s146_s1 }
 0x19a   :  { %s150_s11 = spop %149  ;;  %v125_v54 = vstv %s148_s2  ;;  %v74_v56 = vsel %vm72_vm8, %v73_v52, 0.0 }
 0x19c   :  { %s152_s12 = spop %151 }
 0x19d   :  { %s120_s13 = smul.f32 0.5, %s152_s12 }
 0x19f   :  { %s121_s14 = sadd.f32 %s150_s11, %s120_s13 }
 0x1a1   :  { %v123_v53 = vstv %s121_s14 }
 0x1a2   :  { %v124_v55 = vsel %vm72_vm8, %v123_v53, 0.0 }
 0x1a3   :  { %v126_v57 = vsel %vm70_vm7, %v125_v54, %v124_v55 }
 0x1a4   :  { %v127_v58 = vadd.f32 %v126_v57, %v74_v56 }
 0x1a6   :  { %128 = vst [vmem:[#allocation7] sm:$0xff] %v127_v58 }
 0x1a7   :  { %219 = shalt.err (!%p216_p6)
}
 0x1a8   :  { %s220_s20 = scalar_lea.hbm %s310_s3, 128 }
 0x1a9   :  { %p221_p7 = scmp.ne.s32.totalorder %s310_s3, %s220_s20  ;;  %p224_p8 = scmp.lt.u32.totalorder %s220_s20, %s310_s3 }
 0x1ab   :  { %p226_p9 = pnand %p224_p8, %p221_p7 }
 0x1ad   :  { %229 = shalt.err (!%p226_p9)
}
 0x1ae   :  { %138 = dma.vmem_to_hbm [thread:$0]  %s136_s16, 128, %s310_s3, [#allocation4]  }
 0x1af   :  { %234 = dma.done.wait [#allocation4], 128  }
 0x1b0   :  { %235 = vsyncadd [#allocation4], 4294967168 }
 0x1b1   :  { %142 = vsyncpa [#allocation3], 1 }
 0x1b2   :  { %143 = vsyncpa [#allocation6], 1 }
 0x1b3   :  { %144 = vsyncpa [#allocation4], 1 }

</bundles_post_ra>
